<compile_context>
chip_gen: v6e
topology: v6e:2x2x1
jax: 0.10.0
libtpu: 0.0.40
codegen_flags: <defaults>
</compile_context>

<pallas_src>
import functools

import jax
import jax.numpy as jnp
from jax.experimental import pallas as pl
from jax.experimental.pallas import tpu as pltpu

LN_EPS = 1e-5  # torch.nn.LayerNorm default


def _round_up(x, m):
    return ((x + m - 1) // m) * m


def _pre_layernorm_linear_kernel(x_ref, gamma_ref, beta_ref, w_ref, b_ref,
                                 o_ref, y_ref, *, true_dim, eps):
    # x_ref:     (TM, DIN_P)   activation row tile (resident across col axis)
    # gamma_ref: (1, DIN_P)    LayerNorm weight (resident, zero-padded)
    # beta_ref:  (1, DIN_P)    LayerNorm bias   (resident, zero-padded)
    # w_ref:     (DIN_P, TN)   Linear weight column block, pre-transposed: y @ W
    # b_ref:     (1, TN)       Linear bias column block (zero-padded)
    # o_ref:     (TM, TN)      output tile
    # y_ref:     (TM, DIN_P)   scratch: normalized activations, weight dtype

    # LayerNorm only once per row tile (column step 0), reuse for every W block.
    @pl.when(pl.program_id(1) == 0)
    def _():
        x = x_ref[...].astype(jnp.float32)
        # One-pass statistics; padded lanes of x are zero so the sums are
        # unaffected; divide by the true feature dim, not the padded one.
        inv_d = jnp.float32(1.0 / true_dim)
        s = jnp.sum(x, axis=-1, keepdims=True)
        sq = jnp.sum(x * x, axis=-1, keepdims=True)
        mean = s * inv_d
        var = sq * inv_d - mean * mean
        inv_std = jax.lax.rsqrt(var + eps)

        gamma = gamma_ref[...].astype(jnp.float32)
        beta = beta_ref[...].astype(jnp.float32)
        # Padded lanes: gamma = beta = 0 -> y = 0 there.
        y_ref[...] = ((x - mean) * inv_std * gamma + beta).astype(y_ref.dtype)

    # fn(.) = Linear: matmul in the weight's native dtype on the MXU
    # (bf16 x bf16 -> f32 at full rate), accumulate in f32.
    out = jnp.dot(y_ref[...], w_ref[...], preferred_element_type=jnp.float32)
    out = out + b_ref[...].astype(jnp.float32)
    o_ref[...] = out.astype(o_ref.dtype)


def pre_layer_norm(x, gamma, beta, weight, bias, *, block_rows=256,
                   max_w_block_bytes=8 << 20):
    """fn(LayerNorm(x)) with fn = nn.Linear(dim, dim).

    x:      (batch, seq, dim)
    gamma:  (dim,)  LayerNorm weight
    beta:   (dim,)  LayerNorm bias
    weight: (dim, dim) in PyTorch nn.Linear layout (out_features, in_features);
            the wrapper transposes it so the kernel computes y @ weight.T.
    bias:   (dim,)
    """
    batch, seq, dim = x.shape
    rows = batch * seq

    sublane = 16 if x.dtype == jnp.bfloat16 else 8
    din_p = max(_round_up(dim, 128), 128)              # lane-dense K dim
    tm = min(block_rows, _round_up(rows, sublane))     # row tile
    rows_p = _round_up(rows, tm)

    # Output-column tile: keep a double-buffered W column block within budget.
    w_itemsize = jnp.dtype(weight.dtype).itemsize
    if din_p * din_p * w_itemsize <= max_w_block_bytes:
        tn = din_p
    else:
        tn = max(128, (max_w_block_bytes // (din_p * w_itemsize)) // 128 * 128)
        tn = min(tn, din_p)
    dout_p = max(_round_up(dim, tn), tn)               # lane-dense N dim

    x2d = x.reshape(rows, dim)
    if rows_p != rows or din_p != dim:
        x2d = jnp.pad(x2d, ((0, rows_p - rows), (0, din_p - dim)))

    def pad_vec(v, target):
        v = v.reshape(1, dim)
        if target != dim:
            v = jnp.pad(v, ((0, 0), (0, target - dim)))
        return v

    gamma2d = pad_vec(gamma, din_p)
    beta2d = pad_vec(beta, din_p)
    bias2d = pad_vec(bias, dout_p)

    # PyTorch nn.Linear computes x @ W.T; pre-transpose so the kernel does y @ W.
    w_t = weight.T
    if din_p != dim or dout_p != dim:
        w_t = jnp.pad(w_t, ((0, din_p - dim), (0, dout_p - dim)))

    grid = (rows_p // tm, dout_p // tn)

    # VMEM budget: resident params + y scratch + double-buffered pipelined tiles.
    out_itemsize = jnp.dtype(x.dtype).itemsize
    bytes_resident = (2 * din_p * 4                       # gamma, beta (f32-ish)
                      + tm * din_p * w_itemsize)          # y scratch
    bytes_pipelined = 2 * (tm * din_p * jnp.dtype(x.dtype).itemsize   # x tiles
                           + din_p * tn * w_itemsize                  # W blocks
                           + tn * w_itemsize                          # bias blocks
                           + tm * tn * out_itemsize)                  # out tiles
    vmem_limit = int(min(max(bytes_resident + bytes_pipelined + (8 << 20),
                             32 << 20),
                         64 << 20))

    flops = 2 * rows * dim * dim + 8 * rows * dim
    bytes_accessed = (x2d.size * x2d.dtype.itemsize
                      + w_t.size * w_t.dtype.itemsize
                      + bias2d.size * bias2d.dtype.itemsize
                      + rows_p * dout_p * out_itemsize)

    kernel = functools.partial(_pre_layernorm_linear_kernel,
                               true_dim=dim, eps=LN_EPS)

    out2d = pl.pallas_call(
        kernel,
        out_shape=jax.ShapeDtypeStruct((rows_p, dout_p), x.dtype),
        grid_spec=pltpu.PrefetchScalarGridSpec(
            num_scalar_prefetch=0,
            grid=grid,
            in_specs=[
                pl.BlockSpec((tm, din_p), lambda i, j: (i, 0)),    # x tile
                pl.BlockSpec((1, din_p), lambda i, j: (0, 0)),     # gamma
                pl.BlockSpec((1, din_p), lambda i, j: (0, 0)),     # beta
                pl.BlockSpec((din_p, tn), lambda i, j: (0, j)),    # W col block
                pl.BlockSpec((1, tn), lambda i, j: (0, j)),        # bias block
            ],
            out_specs=pl.BlockSpec((tm, tn), lambda i, j: (i, j)),
            scratch_shapes=[pltpu.VMEM((tm, din_p), w_t.dtype)],   # normalized y
        ),
        compiler_params=pltpu.CompilerParams(
            dimension_semantics=("parallel", "arbitrary"),
            vmem_limit_bytes=vmem_limit,
        ),
        cost_estimate=pl.CostEstimate(
            flops=flops, transcendentals=rows, bytes_accessed=bytes_accessed),
    )(x2d, gamma2d, beta2d, w_t, bias2d)

    out2d = out2d[:rows, :dim]
    return out2d.reshape(batch, seq, dim)


if __name__ == "__main__":
    batch, seq, dim = 2, 8, 32

    key = jax.random.PRNGKey(0)
    kx, kw, kb = jax.random.split(key, 3)

    x = jax.random.normal(kx, (batch, seq, dim), dtype=jnp.float32)

    # LayerNorm params: same init as nn.LayerNorm (weight=1, bias=0).
    gamma = jnp.ones((dim,), dtype=jnp.float32)
    beta = jnp.zeros((dim,), dtype=jnp.float32)

    # fn = Linear(dim, dim): weight kept in PyTorch layout (out, in).
    weight = jax.random.normal(kw, (dim, dim), dtype=jnp.float32) * (1.0 / jnp.sqrt(dim))
    bias = jax.random.normal(kb, (dim,), dtype=jnp.float32) * 0.01

    out = pre_layer_norm(x, gamma, beta, weight, bias)
    out = jax.block_until_ready(out)

    # Pure-JAX reference (matches torch: LayerNorm then Linear with x @ W.T + b).
    mean = jnp.mean(x, axis=-1, keepdims=True)
    var = jnp.mean((x - mean) ** 2, axis=-1, keepdims=True)
    xn = (x - mean) / jnp.sqrt(var + LN_EPS)
    ref = (xn * gamma + beta) @ weight.T + bias
    assert out.shape == ref.shape
    assert jnp.allclose(out, ref, atol=1e-4, rtol=1e-4), "mismatch vs reference"

    print("KERNEL_OK")
</pallas_src>

<mosaic_0001>
module attributes {stable_mosaic.version = 11 : i64} {
  func.func @_pre_layernorm_linear_kernel(%arg0: i32, %arg1: i32, %arg2: memref<16x128xf32, #tpu.memory_space<vmem>>, %arg3: memref<1x128xf32, #tpu.memory_space<vmem>>, %arg4: memref<1x128xf32, #tpu.memory_space<vmem>>, %arg5: memref<128x128xf32, #tpu.memory_space<vmem>>, %arg6: memref<1x128xf32, #tpu.memory_space<vmem>>, %arg7: memref<16x128xf32, #tpu.memory_space<vmem>>, %arg8: memref<16x128xf32, #tpu.memory_space<vmem>>) attributes {dimension_semantics = [#tpu.dimension_semantics<parallel>, #tpu.dimension_semantics<arbitrary>], iteration_bounds = array<i64: 1, 1>, scalar_prefetch = 0 : i64, scratch_operands = 1 : i64, tpu.core_type = #tpu.core_type<tc>, window_params = [{transform_indices = @transform_0, window_bounds = array<i64: 16, 128>}, {pipeline_mode = #tpu.pipeline_mode<synchronous>, transform_indices = @transform_1, window_bounds = array<i64: 1, 128>}, {pipeline_mode = #tpu.pipeline_mode<synchronous>, transform_indices = @transform_2, window_bounds = array<i64: 1, 128>}, {transform_indices = @transform_3, window_bounds = array<i64: 128, 128>}, {transform_indices = @transform_4, window_bounds = array<i64: 1, 128>}, {transform_indices = @transform_5, window_bounds = array<i64: 16, 128>}]} {
    %c0_i32 = arith.constant 0 : i32
    %0 = arith.cmpi eq, %arg1, %c0_i32 : i32
    %1 = arith.extui %0 : i1 to i32
    %c0_i32_0 = arith.constant 0 : i32
    %2 = arith.cmpi ne, %1, %c0_i32_0 : i32
    scf.if %2 {
      %c0_8 = arith.constant 0 : index
      %c0_9 = arith.constant 0 : index
      %10 = vector.load %arg2[%c0_8, %c0_9] : memref<16x128xf32, #tpu.memory_space<vmem>>, vector<16x128xf32>
      %cst_10 = arith.constant dense<0.000000e+00> : vector<16xf32>
      %11 = vector.multi_reduction <add>, %10, %cst_10 [1] : vector<16x128xf32> to vector<16xf32>
      %12 = vector.shape_cast %11 : vector<16xf32> to vector<16x1xf32>
      %13 = arith.mulf %10, %10 : vector<16x128xf32>
      %cst_11 = arith.constant dense<0.000000e+00> : vector<16xf32>
      %14 = vector.multi_reduction <add>, %13, %cst_11 [1] : vector<16x128xf32> to vector<16xf32>
      %15 = vector.shape_cast %14 : vector<16xf32> to vector<16x1xf32>
      %cst_12 = arith.constant 3.125000e-02 : f32
      %16 = vector.broadcast %cst_12 : f32 to vector<16x1xf32>
      %17 = arith.mulf %12, %16 : vector<16x1xf32>
      %cst_13 = arith.constant 3.125000e-02 : f32
      %18 = vector.broadcast %cst_13 : f32 to vector<16x1xf32>
      %19 = arith.mulf %15, %18 : vector<16x1xf32>
      %20 = arith.mulf %17, %17 : vector<16x1xf32>
      %21 = arith.subf %19, %20 : vector<16x1xf32>
      %cst_14 = arith.constant 9.99999974E-6 : f32
      %22 = vector.broadcast %cst_14 : f32 to vector<16x1xf32>
      %23 = arith.addf %21, %22 : vector<16x1xf32>
      %24 = math.rsqrt %23 : vector<16x1xf32>
      %c0_15 = arith.constant 0 : index
      %c0_16 = arith.constant 0 : index
      %25 = vector.load %arg3[%c0_15, %c0_16] : memref<1x128xf32, #tpu.memory_space<vmem>>, vector<1x128xf32>
      %c0_17 = arith.constant 0 : index
      %c0_18 = arith.constant 0 : index
      %26 = vector.load %arg4[%c0_17, %c0_18] : memref<1x128xf32, #tpu.memory_space<vmem>>, vector<1x128xf32>
      %27 = vector.broadcast %17 : vector<16x1xf32> to vector<16x128xf32>
      %28 = arith.subf %10, %27 : vector<16x128xf32>
      %29 = vector.broadcast %24 : vector<16x1xf32> to vector<16x128xf32>
      %30 = arith.mulf %28, %29 : vector<16x128xf32>
      %31 = vector.broadcast %25 : vector<1x128xf32> to vector<16x128xf32>
      %32 = arith.mulf %30, %31 : vector<16x128xf32>
      %33 = vector.broadcast %26 : vector<1x128xf32> to vector<16x128xf32>
      %34 = arith.addf %32, %33 : vector<16x128xf32>
      %c0_19 = arith.constant 0 : index
      %c0_20 = arith.constant 0 : index
      %35 = vector.load %arg8[%c0_19, %c0_20] : memref<16x128xf32, #tpu.memory_space<vmem>>, vector<16x128xf32>
      tpu.vector_store %arg8[%c0_19, %c0_20], %34 {strides = array<i32>} : memref<16x128xf32, #tpu.memory_space<vmem>>, vector<16x128xf32>,
    } else {
    }
    %c0 = arith.constant 0 : index
    %c0_1 = arith.constant 0 : index
    %3 = vector.load %arg8[%c0, %c0_1] : memref<16x128xf32, #tpu.memory_space<vmem>>, vector<16x128xf32>
    %c0_2 = arith.constant 0 : index
    %c0_3 = arith.constant 0 : index
    %4 = vector.load %arg5[%c0_2, %c0_3] : memref<128x128xf32, #tpu.memory_space<vmem>>, vector<128x128xf32>
    %cst = arith.constant dense<0.000000e+00> : vector<16x128xf32>
    %5 = tpu.matmul %3, %4, %cst {dimension_numbers = #tpu.dot_dimension_numbers<[1], [0], [0], [1], [0, 0, 1, 1], [], []>} : vector<16x128xf32>, vector<128x128xf32>, vector<16x128xf32> -> vector<16x128xf32>
    %c0_4 = arith.constant 0 : index
    %c0_5 = arith.constant 0 : index
    %6 = vector.load %arg6[%c0_4, %c0_5] : memref<1x128xf32, #tpu.memory_space<vmem>>, vector<1x128xf32>
    %7 = vector.broadcast %6 : vector<1x128xf32> to vector<16x128xf32>
    %8 = arith.addf %5, %7 : vector<16x128xf32>
    %c0_6 = arith.constant 0 : index
    %c0_7 = arith.constant 0 : index
    %9 = vector.load %arg7[%c0_6, %c0_7] : memref<16x128xf32, #tpu.memory_space<vmem>>, vector<16x128xf32>
    tpu.vector_store %arg7[%c0_6, %c0_7], %8 {strides = array<i32>} : memref<16x128xf32, #tpu.memory_space<vmem>>, vector<16x128xf32>,
    return
  }
  func.func @transform_0(%arg0: i32, %arg1: i32) -> (i32, i32) {
    %c0_i32 = arith.constant 0 : i32
    %c0_i32_0 = arith.constant 0 : i32
    return %arg0, %c0_i32 : i32, i32
  }
  func.func @transform_1(%arg0: i32, %arg1: i32) -> (i32, i32) {
    %c0_i32 = arith.constant 0 : i32
    %c0_i32_0 = arith.constant 0 : i32
    %c0_i32_1 = arith.constant 0 : i32
    return %c0_i32, %c0_i32_0 : i32, i32
  }
  func.func @transform_2(%arg0: i32, %arg1: i32) -> (i32, i32) {
    %c0_i32 = arith.constant 0 : i32
    %c0_i32_0 = arith.constant 0 : i32
    %c0_i32_1 = arith.constant 0 : i32
    return %c0_i32, %c0_i32_0 : i32, i32
  }
  func.func @transform_3(%arg0: i32, %arg1: i32) -> (i32, i32) {
    %c0_i32 = arith.constant 0 : i32
    %c0_i32_0 = arith.constant 0 : i32
    return %c0_i32, %arg1 : i32, i32
  }
  func.func @transform_4(%arg0: i32, %arg1: i32) -> (i32, i32) {
    %c0_i32 = arith.constant 0 : i32
    %c0_i32_0 = arith.constant 0 : i32
    return %c0_i32, %arg1 : i32, i32
  }
  func.func @transform_5(%arg0: i32, %arg1: i32) -> (i32, i32) {
    %c0_i32 = arith.constant 0 : i32
    return %arg0, %arg1 : i32, i32
  }
}

</mosaic_0001>

<bundles_post_ra>
// kernel: tpu_custom_call.1
= control target key start
LH: loop header
LB: loop body
LE: loop exit
PB: predicated region body
PF: predicated region fallthrough
CT: control target
= control target key end

     0   :  { %10 = vsyncpa [#allocation4], 0  ;;  %s426_s0 = inlined_call_operand.hbm [shape: f32[16,128], index: 0, kind: input, shape index: {}]   ;;  %s427_s1 = inlined_call_operand.vmem [shape: f32[1,128], index: 1, kind: input, shape index: {}]   ;;  %s428_s2 = inlined_call_operand.vmem [shape: f32[1,128], index: 2, kind: input, shape index: {}]   ;;  %s429_s3 = inlined_call_operand.hbm [shape: f32[128,128], index: 3, kind: input, shape index: {}]   ;;  %s430_s4 = inlined_call_operand.vmem [shape: f32[1,128], index: 4, kind: input, shape index: {}]   ;;  %s431_s5 = inlined_call_operand.hbm [shape: f32[16,128], index: 5, kind: output, shape index: {}]  }
   0x1   :  { %11 = vsyncpa [#allocation7], 0 }
   0x2   :  { %12 = vsyncpa [#allocation5], 0  ;;  %s352_s18 = smov [#allocation3]  }
   0x3   :  { %s18_s19 = sshll.u32 %s352_s18, 4  ;;  %s19_s19 = int_to_ptr.vmem [resolvable:$true] %s18_s19 }
   0x4   :  { %s294_s20 = scalar_lea.vmem %s19_s19, 256  ;;  %p299_p1 = scmp.lt.s32.totalorder %s19_s19, %s19_s19 }
   0x5   :  { %p295_p0 = scmp.ne.s32.totalorder %s19_s19, %s294_s20  ;;  %p300_p2 = scmp.lt.s32.totalorder %s294_s20, %s294_s20 }
   0x7   :  { %p301_p3 = por %p300_p2, %p299_p1 }
   0x9   :  { %p302_p4 = pnand %p301_p3, %p295_p0 }
   0xb   :  { %305 = shalt.err (!%p302_p4)
}
   0xc   :  { %s353_s21 = smov 128   ;;  %s354_s22 = smov 8  }
   0xd   :  { %24 = dma.hbm_to_vmem [thread:$0]  %s426_s0, 256, %s19_s19, [#allocation4], %s353_s21, %s353_s21, %s354_s22  }
   0xe   :  { %s355_s25 = smov [#allocation6]  }
   0xf   :  { %s34_s26 = sshll.u32 %s355_s25, 4  ;;  %s35_s26 = int_to_ptr.vmem [resolvable:$true] %s34_s26 }
  0x10   :  { %s314_s27 = scalar_lea.vmem %s35_s26, 2048  ;;  %p319_p6 = scmp.lt.s32.totalorder %s35_s26, %s35_s26 }
  0x11   :  { %p315_p5 = scmp.ne.s32.totalorder %s35_s26, %s314_s27  ;;  %p320_p7 = scmp.lt.s32.totalorder %s314_s27, %s314_s27 }
  0x13   :  { %p321_p8 = por %p320_p7, %p319_p6 }
  0x15   :  { %p322_p9 = pnand %p321_p8, %p315_p5 }
  0x17   :  { %325 = shalt.err (!%p322_p9)
}
  0x18   :  { %40 = dma.hbm_to_vmem [thread:$0]  %s429_s3, 2048, %s35_s26, [#allocation7], %s353_s21, %s353_s21, %s354_s22  }
  0x19   :  { %346 = dma.done.wait [#allocation4], 256  }
  0x1a   :  { %347 = vsyncadd [#allocation4], 4294967040 }
  0x1b   :  { %348 = dma.done.wait [#allocation7], 2048  }
  0x1c   :  { %349 = vsyncadd [#allocation7], 4294965248  ;;  %v399_v0 = vld [vmem:[#allocation3] sm:$0xff]  ;;  %v401_v1 = vld [vmem:[#allocation3 + $0x8] sm:$0xff] }
  0x1d   :  { %55 = vadd.xlane.f32.xlu0 %v399_v0  ;;  %v59_v2 = vmul.f32 %v399_v0, %v399_v0  ;;  %v60_v3 = vmul.f32 %v401_v1, %v401_v1  ;;  %v118_v4 = vld [vmem:[#allocation6 + $0x78] sm:$0xff]  ;;  %v117_v5 = vld [vmem:[#allocation6 + $0x70] sm:$0xff]  ;;  %v116_v6 = vld [vmem:[#allocation6 + $0x68] sm:$0xff] }
  0x1e   :  { %242 = vmatprep.subr.mxu0 %v118_v4  ;;  %v115_v7 = vld [vmem:[#allocation6 + $0x60] sm:$0xff]  ;;  %v114_v8 = vld [vmem:[#allocation6 + $0x58] sm:$0xff]  ;;  %v113_v9 = vld [vmem:[#allocation6 + $0x50] sm:$0xff] }
  0x1f   :  { %61 = vadd.xlane.f32.xlu1 %v59_v2  ;;  %243 = vmatpush3.msra.mxu0 %v118_v4  ;;  %v112_v10 = vld [vmem:[#allocation6 + $0x48] sm:$0xff]  ;;  %v111_v11 = vld [vmem:[#allocation6 + $0x40] sm:$0xff]  ;;  %v110_v12 = vld [vmem:[#allocation6 + $0x38] sm:$0xff] }
  0x20   :  { %244 = vmatprep.subr.mxu0 %v117_v5  ;;  %v109_v13 = vld [vmem:[#allocation6 + $0x30] sm:$0xff]  ;;  %v108_v14 = vld [vmem:[#allocation6 + $0x28] sm:$0xff]  ;;  %v107_v15 = vld [vmem:[#allocation6 + $0x20] sm:$0xff] }
  0x21   :  { %57 = vadd.xlane.f32.xlu0 %v401_v1  ;;  %245 = vmatpush3.msra.mxu0 %v117_v5  ;;  %v106_v16 = vld [vmem:[#allocation6 + $0x18] sm:$0xff]  ;;  %v105_v17 = vld [vmem:[#allocation6 + $0x10] sm:$0xff]  ;;  %v104_v18 = vld [vmem:[#allocation6 + $0x8] sm:$0xff] }
  0x22   :  { %246 = vmatprep.subr.mxu0 %v116_v6  ;;  %v103_v19 = vld [vmem:[#allocation6] sm:$0xff]  ;;  %v221_v36 = vld [vmem:[%s427_s1] ss:$0 sm:$0xff]  ;;  %s356_s1 = smov [#allocation8]  }
  0x23   :  { %63 = vadd.xlane.f32.xlu1 %v60_v3  ;;  %247 = vmatpush3.msra.mxu0 %v116_v6  ;;  %v222_v38 = vld [vmem:[%s428_s2] ss:$0 sm:$0xff]  ;;  %s208_s9 = sshll.u32 %s356_s1, 4  ;;  %s209_s9 = int_to_ptr.vmem [resolvable:$true] %s208_s9 }
  0x24   :  { %248 = vmatprep.subr.mxu0 %v115_v7  ;;  %v223_v46 = vld [vmem:[%s430_s4] ss:$0 sm:$0xff]  ;;  %s326_s2 = scalar_lea.vmem %s209_s9, 256  ;;  %p331_p11 = scmp.lt.s32.totalorder %s209_s9, %s209_s9 }
  0x25   :  { %249 = vmatpush3.msra.mxu0 %v115_v7  ;;  %p327_p10 = scmp.ne.s32.totalorder %s209_s9, %s326_s2  ;;  %p332_p12 = scmp.lt.s32.totalorder %s326_s2, %s326_s2 }
  0x26   :  { %250 = vmatprep.subr.mxu0 %v114_v8 }
  0x27   :  { %251 = vmatpush3.msra.mxu0 %v114_v8  ;;  %p333_p13 = por %p332_p12, %p331_p11 }
  0x28   :  { %252 = vmatprep.subr.mxu0 %v113_v9 }
  0x29   :  { %253 = vmatpush3.msra.mxu0 %v113_v9  ;;  %p334_p0 = pnand %p333_p13, %p327_p10 }
  0x2a   :  { %254 = vmatprep.subr.mxu0 %v112_v10 }
  0x2b   :  { %255 = vmatpush3.msra.mxu0 %v112_v10 }
  0x2c   :  { %256 = vmatprep.subr.mxu0 %v111_v11 }
  0x2d   :  { %257 = vmatpush3.msra.mxu0 %v111_v11 }
  0x2e   :  { %258 = vmatprep.subr.mxu0 %v110_v12 }
  0x2f   :  { %259 = vmatpush3.msra.mxu0 %v110_v12 }
  0x30   :  { %260 = vmatprep.subr.mxu0 %v109_v13 }
  0x31   :  { %261 = vmatpush3.msra.mxu0 %v109_v13 }
  0x32   :  { %262 = vmatprep.subr.mxu0 %v108_v14 }
  0x33   :  { %263 = vmatpush3.msra.mxu0 %v108_v14 }
  0x34   :  { %264 = vmatprep.subr.mxu0 %v107_v15 }
  0x35   :  { %265 = vmatpush3.msra.mxu0 %v107_v15 }
  0x36   :  { %266 = vmatprep.subr.mxu0 %v106_v16 }
  0x37   :  { %267 = vmatpush3.msra.mxu0 %v106_v16 }
  0x38   :  { %268 = vmatprep.subr.mxu0 %v105_v17 }
  0x39   :  { %269 = vmatpush3.msra.mxu0 %v105_v17 }
  0x3a   :  { %270 = vmatprep.subr.mxu0 %v104_v18 }
  0x3b   :  { %271 = vmatpush3.msra.mxu0 %v104_v18 }
  0x3c   :  { %272 = vmatprep.subr.mxu0 %v103_v19 }
  0x3d   :  { %273 = vmatpush3.msra.mxu0 %v103_v19 }
  0xa6   :  { %v56_v20 = vpop.xlane.xlu0 %55 }
  0xa7   :  { %v65_v21 = vmul.f32 0.03125, %v56_v20 }
  0xa8   :  { %v62_v22 = vpop.xlane.xlu1 %61 }
  0xa9   :  { %v69_v23 = vmul.f32 %v65_v21, %v65_v21  ;;  %v67_v24 = vmul.f32 0.03125, %v62_v22  ;;  %v79_v34 = vsub.f32 %v399_v0, %v65_v21 }
  0xaa   :  { %v58_v25 = vpop.xlane.xlu0 %57 }
  0xab   :  { %v71_v26 = vsub.f32 %v67_v24, %v69_v23  ;;  %v66_v27 = vmul.f32 0.03125, %v58_v25 }
  0xac   :  { %v64_v28 = vpop.xlane.xlu1 %63 }
  0xad   :  { %v73_v29 = vadd.f32 1e-05, %v71_v26  ;;  %v70_v30 = vmul.f32 %v66_v27, %v66_v27  ;;  %v68_v31 = vmul.f32 0.03125, %v64_v28  ;;  %v80_v39 = vsub.f32 %v401_v1, %v66_v27 }
  0xaf   :  { %282 = vrsqrt.f32 %v73_v29  ;;  %v72_v32 = vsub.f32 %v68_v31, %v70_v30 }
  0xb1   :  { %v74_v33 = vadd.f32 1e-05, %v72_v32 }
  0xb3   :  { %284 = vrsqrt.f32 %v74_v33 }
  0xbc   :  { %v283_v35 = vpop.eup %282 }
  0xbd   :  { %v81_v37 = vmul.f32 %v283_v35, %v79_v34 }
  0xbf   :  { %v89_v40 = vmul.f32 %v221_v36, %v81_v37 }
  0xc0   :  { %v285_v41 = vpop.eup %284 }
  0xc1   :  { %v82_v42 = vmul.f32 %v285_v41, %v80_v39  ;;  %v97_v43 = vadd.f32 %v222_v38, %v89_v40 }
  0xc3   :  { %v90_v44 = vmul.f32 %v221_v36, %v82_v42  ;;  %274 = vmatprep.mubr.f32.mxu0 %v97_v43 }
  0xc5   :  { %v98_v45 = vadd.f32 %v222_v38, %v90_v44 }
  0xc7   :  { %275 = vmatmul.mubr.f32.vlgmr.msra.gmra.mxu0 %v98_v45 }
 0x187   :  { %v276_v47 = vpop.f32.mrf.mxu0 }
 0x188   :  { %v198_v48 = vadd.f32 %v276_v47, %v223_v46 }
 0x189   :  { %v192_v49 = vpop.f32.mrf.mxu0 }
 0x18a   :  { %202 = vst [vmem:[#allocation8 + $0x8] sm:$0xff] %v198_v48  ;;  %v193_v50 = vadd.f32 %v223_v46, %v192_v49 }
 0x18c   :  { %201 = vst [vmem:[#allocation8] sm:$0xff] %v193_v50 }
 0x18d   :  { %337 = shalt.err (!%p334_p0)
}
 0x18e   :  { %214 = dma.vmem_to_hbm [thread:$0]  %s209_s9, 256, %s431_s5, [#allocation5], %s353_s21, %s353_s21, %s354_s22  }
 0x18f   :  { %350 = dma.done.wait [#allocation5], 256  }
 0x190   :  { %351 = vsyncadd [#allocation5], 4294967040 }
 0x191   :  { %218 = vsyncpa [#allocation4], 1 }
 0x192   :  { %219 = vsyncpa [#allocation7], 1 }
 0x193   :  { %220 = vsyncpa [#allocation5], 1 }

</bundles_post_ra>
